<compile_context>
chip_gen: v7x
topology: tpu7x:2x2x1
jax: 0.10.0
libtpu: 0.0.40
codegen_flags: <defaults>
</compile_context>

<pallas_src>
import jax
import jax.numpy as jnp
import numpy as np
from jax import lax
from jax.experimental import pallas as pl
from jax.experimental.pallas import tpu as pltpu

EMB_VOCAB = 256
EMB_DIM = 512  # LSTM input size fixed by the module (Embedding(256, 512), LSTM(512, Hd))


def row_lstm_kernel(gx_ref, whh_ref, out_ref, hc_ref):
    # gx_ref:  (tile_n, T*4Hd) f32  pre-projected input gates; timestep t occupies lanes
    #                               [t*4Hd, (t+1)*4Hd) (gate order i, f, o, g)
    # whh_ref: (Hd, 4Hd)       bf16 W_hh^T (gate order i, f, o, g)
    # out_ref: (tile_n, T*Hd)  f32  hidden states, timestep t at lanes [t*Hd, (t+1)*Hd)
    # hc_ref:  (tile_n, 2*Hd)  f32  [final h | final c] per batch-lane
    tile_n = gx_ref.shape[0]
    Hd, G4 = whh_ref.shape          # G4 = 4*Hd
    T = gx_ref.shape[1] // G4

    whh = whh_ref[...]              # hoisted loop-invariant load (bf16)

    h = jnp.zeros((tile_n, Hd), jnp.float32)
    c = jnp.zeros((tile_n, Hd), jnp.float32)
    hs = []
    # T is small & static here -> full unroll keeps carries in vregs.
    for t in range(T):
        gx_t = gx_ref[:, t * G4:(t + 1) * G4]                 # static, 128-lane-aligned slice
        gates = gx_t + jnp.dot(h.astype(jnp.bfloat16), whh,   # bf16 MXU, f32 accumulate
                               preferred_element_type=jnp.float32)
        sig = jax.nn.sigmoid(gates[:, :3 * Hd])               # i, f, o in one EUP push
        g_g = jnp.tanh(gates[:, 3 * Hd:])                     # g in a second EUP push
        i_g = sig[:, 0 * Hd:1 * Hd]
        f_g = sig[:, 1 * Hd:2 * Hd]
        o_g = sig[:, 2 * Hd:3 * Hd]
        c = f_g * c + i_g * g_g
        h = o_g * jnp.tanh(c)
        hs.append(h)

    out_ref[...] = jnp.concatenate(hs, axis=1)                # one lane-dense store
    hc_ref[...] = jnp.concatenate([h, c], axis=1)             # packed final state


def row_encoding_forward(enc_output, emb_weight, w_ih, w_hh, b_ih, b_hh,
                         tile_n_max=256):
    B, C, H, W = enc_output.shape
    assert C == EMB_DIM
    Hd = w_hh.shape[1]
    G4 = 4 * Hd
    T = W + 1
    N = B * H                     # fold rows into the batch; lane n = b*H + h_row (b-major)

    # --- Permute gate blocks from PyTorch order (i, f, g, o) to (i, f, o, g) ---
    def perm_gates(m):
        i, f, g, o = jnp.split(m, 4, axis=0)
        return jnp.concatenate([i, f, o, g], axis=0)

    w_ih_p = perm_gates(w_ih)                                   # (4Hd, C)
    w_hh_p = perm_gates(w_hh)                                   # (4Hd, Hd)
    bias_p = perm_gates((b_ih + b_hh)[:, None])[:, 0]           # (4Hd,)

    # --- Input projection in XLA: one fused MXU matmul, transpose folded into the dot ---
    wih_t = jnp.transpose(w_ih_p).astype(jnp.bfloat16)          # (C, 4Hd)
    gx_rows = jnp.einsum('bchw,cg->bhwg', enc_output.astype(jnp.bfloat16), wih_t,
                         preferred_element_type=jnp.float32) + bias_p        # (B,H,W,4Hd)
    gx_pos = jnp.dot(emb_weight[:H].astype(jnp.bfloat16), wih_t,
                     preferred_element_type=jnp.float32) + bias_p            # (H, 4Hd)
    gx_pos = jnp.broadcast_to(gx_pos[None], (B, H, G4))
    # (B, H, T, 4Hd): timestep 0 = position embedding, 1..W = encoder row columns
    gx = jnp.concatenate([gx_pos[:, :, None, :], gx_rows], axis=2).reshape(N, T * G4)

    # --- Pad / tile N (sublane-aligned); padded lanes run garbage and are discarded ---
    tile_n = min(tile_n_max, ((N + 7) // 8) * 8)
    n_tiles = pl.cdiv(N, tile_n)
    N_pad = n_tiles * tile_n
    if N_pad != N:
        gx = jnp.pad(gx, ((0, N_pad - N), (0, 0)))

    whh_t = jnp.transpose(w_hh_p).astype(jnp.bfloat16)          # (Hd, 4Hd) recurrent weights

    # Explicit scoped-VMEM budget: double-buffered gx / out / hc blocks + resident weights.
    vmem_need = 2 * (tile_n * T * G4 * 4 + tile_n * T * Hd * 4 + tile_n * 2 * Hd * 4) \
        + Hd * G4 * 2
    vmem_limit = int(min(max(vmem_need + (2 << 20), 8 << 20), 100 << 20))

    out, hc = pl.pallas_call(
        row_lstm_kernel,
        out_shape=(
            jax.ShapeDtypeStruct((N_pad, T * Hd), jnp.float32),
            jax.ShapeDtypeStruct((N_pad, 2 * Hd), jnp.float32),
        ),
        grid_spec=pltpu.PrefetchScalarGridSpec(
            num_scalar_prefetch=0,
            grid=(n_tiles,),
            in_specs=[
                pl.BlockSpec((tile_n, T * G4), lambda i: (i, 0)),   # gx tile (pipelined)
                pl.BlockSpec((Hd, G4), lambda i: (0, 0)),           # W_hh^T (stays resident)
            ],
            out_specs=[
                pl.BlockSpec((tile_n, T * Hd), lambda i: (i, 0)),
                pl.BlockSpec((tile_n, 2 * Hd), lambda i: (i, 0)),
            ],
        ),
        compiler_params=pltpu.CompilerParams(
            dimension_semantics=("parallel",),      # megacore-shardable on v7x
            vmem_limit_bytes=vmem_limit),
    )(gx, whh_t)

    # (N, T*Hd) with N = B*H (b-major) is row-major identical to (B, H*T, Hd): pure reshape.
    final = out[:N].reshape(B, H * T, Hd)
    # hidden/cell of the LAST row's LSTM run: batch-lane b*H + (H-1)
    hc_last = hc[:N].reshape(B, H, 2 * Hd)[:, H - 1, :]
    hidden = hc_last[None, :, :Hd]
    cell = hc_last[None, :, Hd:]
    return final, hidden, cell


def row_encoding_ref(enc_output, emb_weight, w_ih, w_hh, b_ih, b_hh):
    """Pure-JAX fp32 reference mirroring the PyTorch forward exactly."""
    B, C, H, W = enc_output.shape
    Hd = w_hh.shape[1]

    def lstm(x_seq):
        def step(carry, x_t):
            h, c = carry
            gates = x_t @ w_ih.T + b_ih + h @ w_hh.T + b_hh
            i, f, g, o = jnp.split(gates, 4, axis=-1)
            c_new = jax.nn.sigmoid(f) * c + jax.nn.sigmoid(i) * jnp.tanh(g)
            h_new = jax.nn.sigmoid(o) * jnp.tanh(c_new)
            return (h_new, c_new), h_new
        init = (jnp.zeros((B, Hd), jnp.float32), jnp.zeros((B, Hd), jnp.float32))
        (h, c), ys = lax.scan(step, init, x_seq)
        return ys, h, c

    outs, h, c = [], None, None
    for wh in range(H):
        row = jnp.transpose(enc_output[:, :, wh, :], (2, 0, 1))          # (W, B, C)
        pos = jnp.broadcast_to(emb_weight[wh][None, None, :], (1, B, C))
        seq = jnp.concatenate([pos, row], axis=0)                        # (W+1, B, C)
        ys, h, c = lstm(seq)
        outs.append(ys[None])
    final = jnp.concatenate(outs, axis=0).reshape(H * (W + 1), B, Hd)
    return jnp.transpose(final, (1, 0, 2)), h[None], c[None]


if __name__ == "__main__":
    key = jax.random.PRNGKey(0)
    B, C, H, W = 2, EMB_DIM, 4, 8      # small spatial grid; channels fixed at 512 by the module
    dec_hid_dim = 32
    k1, k2, k3, k4, k5, k6 = jax.random.split(key, 6)

    enc_output = jax.random.normal(k1, (B, C, H, W), jnp.float32)
    emb_weight = jax.random.normal(k2, (EMB_VOCAB, EMB_DIM), jnp.float32)
    bound = float(1.0 / np.sqrt(dec_hid_dim))
    w_ih = jax.random.uniform(k3, (4 * dec_hid_dim, EMB_DIM), jnp.float32, -bound, bound)
    w_hh = jax.random.uniform(k4, (4 * dec_hid_dim, dec_hid_dim), jnp.float32, -bound, bound)
    b_ih = jax.random.uniform(k5, (4 * dec_hid_dim,), jnp.float32, -bound, bound)
    b_hh = jax.random.uniform(k6, (4 * dec_hid_dim,), jnp.float32, -bound, bound)

    final, hidden, cell = jax.block_until_ready(
        jax.jit(row_encoding_forward)(enc_output, emb_weight, w_ih, w_hh, b_ih, b_hh))

    assert final.shape == (B, H * (W + 1), dec_hid_dim)
    assert hidden.shape == (1, B, dec_hid_dim)
    assert cell.shape == (1, B, dec_hid_dim)

    ref_final, ref_h, ref_c = row_encoding_ref(enc_output, emb_weight, w_ih, w_hh, b_ih, b_hh)
    # bf16 on the projection + recurrent matmul (fp32 accumulation / carries) -> loose tolerance.
    np.testing.assert_allclose(np.asarray(final), np.asarray(ref_final), atol=3e-2, rtol=3e-2)
    np.testing.assert_allclose(np.asarray(hidden), np.asarray(ref_h), atol=3e-2, rtol=3e-2)
    np.testing.assert_allclose(np.asarray(cell), np.asarray(ref_c), atol=3e-2, rtol=3e-2)

    print("KERNEL_OK")
</pallas_src>

<mosaic_0001>
module attributes {stable_mosaic.version = 11 : i64} {
  func.func @row_lstm_kernel(%arg0: i32, %arg1: memref<8x1152xf32, #tpu.memory_space<vmem>>, %arg2: memref<32x128xbf16, #tpu.memory_space<vmem>>, %arg3: memref<8x288xf32, #tpu.memory_space<vmem>>, %arg4: memref<8x64xf32, #tpu.memory_space<vmem>>) attributes {dimension_semantics = [#tpu.dimension_semantics<parallel>], iteration_bounds = array<i64: 1>, scalar_prefetch = 0 : i64, scratch_operands = 0 : i64, tpu.core_type = #tpu.core_type<tc>, window_params = [{transform_indices = @transform_0, window_bounds = array<i64: 8, 1152>}, {pipeline_mode = #tpu.pipeline_mode<synchronous>, transform_indices = @transform_1, window_bounds = array<i64: 32, 128>}, {transform_indices = @transform_2, window_bounds = array<i64: 8, 288>}, {transform_indices = @transform_3, window_bounds = array<i64: 8, 64>}]} {
    %c0 = arith.constant 0 : index
    %c0_0 = arith.constant 0 : index
    %0 = vector.load %arg2[%c0, %c0_0] : memref<32x128xbf16, #tpu.memory_space<vmem>>, vector<32x128xbf16>
    %cst = arith.constant 0.000000e+00 : f32
    %1 = vector.broadcast %cst : f32 to vector<8x32xf32>
    %cst_1 = arith.constant 0.000000e+00 : f32
    %2 = vector.broadcast %cst_1 : f32 to vector<8x32xf32>
    %c0_2 = arith.constant 0 : index
    %c0_3 = arith.constant 0 : index
    %3 = vector.load %arg1[%c0_2, %c0_3] : memref<8x1152xf32, #tpu.memory_space<vmem>>, vector<8x128xf32>
    %4 = arith.truncf %1 : vector<8x32xf32> to vector<8x32xbf16>
    %cst_4 = arith.constant dense<0.000000e+00> : vector<8x128xf32>
    %5 = tpu.matmul %4, %0, %cst_4 {dimension_numbers = #tpu.dot_dimension_numbers<[1], [0], [0], [1], [0, 0, 1, 1], [], []>} : vector<8x32xbf16>, vector<32x128xbf16>, vector<8x128xf32> -> vector<8x128xf32>
    %6 = arith.addf %3, %5 : vector<8x128xf32>
    %7 = vector.extract_strided_slice %6 {offsets = [0, 0], sizes = [8, 96], strides = [1, 1]} : vector<8x128xf32> to vector<8x96xf32>
    %8 = arith.negf %7 : vector<8x96xf32>
    %9 = math.exp %8 : vector<8x96xf32>
    %cst_5 = arith.constant 1.000000e+00 : f32
    %10 = vector.broadcast %cst_5 : f32 to vector<8x96xf32>
    %11 = arith.addf %10, %9 : vector<8x96xf32>
    %12 = arith.divf %10, %11 : vector<8x96xf32>
    %13 = vector.extract_strided_slice %6 {offsets = [0, 96], sizes = [8, 32], strides = [1, 1]} : vector<8x128xf32> to vector<8x32xf32>
    %14 = math.tanh %13 : vector<8x32xf32>
    %15 = vector.extract_strided_slice %12 {offsets = [0, 0], sizes = [8, 32], strides = [1, 1]} : vector<8x96xf32> to vector<8x32xf32>
    %16 = vector.extract_strided_slice %12 {offsets = [0, 32], sizes = [8, 32], strides = [1, 1]} : vector<8x96xf32> to vector<8x32xf32>
    %17 = vector.extract_strided_slice %12 {offsets = [0, 64], sizes = [8, 32], strides = [1, 1]} : vector<8x96xf32> to vector<8x32xf32>
    %18 = arith.mulf %16, %2 : vector<8x32xf32>
    %19 = arith.mulf %15, %14 : vector<8x32xf32>
    %20 = arith.addf %18, %19 : vector<8x32xf32>
    %21 = math.tanh %20 : vector<8x32xf32>
    %22 = arith.mulf %17, %21 : vector<8x32xf32>
    %c0_6 = arith.constant 0 : index
    %c128 = arith.constant 128 : index
    %23 = vector.load %arg1[%c0_6, %c128] : memref<8x1152xf32, #tpu.memory_space<vmem>>, vector<8x128xf32>
    %24 = arith.truncf %22 : vector<8x32xf32> to vector<8x32xbf16>
    %cst_7 = arith.constant dense<0.000000e+00> : vector<8x128xf32>
    %25 = tpu.matmul %24, %0, %cst_7 {dimension_numbers = #tpu.dot_dimension_numbers<[1], [0], [0], [1], [0, 0, 1, 1], [], []>} : vector<8x32xbf16>, vector<32x128xbf16>, vector<8x128xf32> -> vector<8x128xf32>
    %26 = arith.addf %23, %25 : vector<8x128xf32>
    %27 = vector.extract_strided_slice %26 {offsets = [0, 0], sizes = [8, 96], strides = [1, 1]} : vector<8x128xf32> to vector<8x96xf32>
    %28 = arith.negf %27 : vector<8x96xf32>
    %29 = math.exp %28 : vector<8x96xf32>
    %cst_8 = arith.constant 1.000000e+00 : f32
    %30 = vector.broadcast %cst_8 : f32 to vector<8x96xf32>
    %31 = arith.addf %30, %29 : vector<8x96xf32>
    %32 = arith.divf %30, %31 : vector<8x96xf32>
    %33 = vector.extract_strided_slice %26 {offsets = [0, 96], sizes = [8, 32], strides = [1, 1]} : vector<8x128xf32> to vector<8x32xf32>
    %34 = math.tanh %33 : vector<8x32xf32>
    %35 = vector.extract_strided_slice %32 {offsets = [0, 0], sizes = [8, 32], strides = [1, 1]} : vector<8x96xf32> to vector<8x32xf32>
    %36 = vector.extract_strided_slice %32 {offsets = [0, 32], sizes = [8, 32], strides = [1, 1]} : vector<8x96xf32> to vector<8x32xf32>
    %37 = vector.extract_strided_slice %32 {offsets = [0, 64], sizes = [8, 32], strides = [1, 1]} : vector<8x96xf32> to vector<8x32xf32>
    %38 = arith.mulf %36, %20 : vector<8x32xf32>
    %39 = arith.mulf %35, %34 : vector<8x32xf32>
    %40 = arith.addf %38, %39 : vector<8x32xf32>
    %41 = math.tanh %40 : vector<8x32xf32>
    %42 = arith.mulf %37, %41 : vector<8x32xf32>
    %c0_9 = arith.constant 0 : index
    %c256 = arith.constant 256 : index
    %43 = vector.load %arg1[%c0_9, %c256] : memref<8x1152xf32, #tpu.memory_space<vmem>>, vector<8x128xf32>
    %44 = arith.truncf %42 : vector<8x32xf32> to vector<8x32xbf16>
    %cst_10 = arith.constant dense<0.000000e+00> : vector<8x128xf32>
    %45 = tpu.matmul %44, %0, %cst_10 {dimension_numbers = #tpu.dot_dimension_numbers<[1], [0], [0], [1], [0, 0, 1, 1], [], []>} : vector<8x32xbf16>, vector<32x128xbf16>, vector<8x128xf32> -> vector<8x128xf32>
    %46 = arith.addf %43, %45 : vector<8x128xf32>
    %47 = vector.extract_strided_slice %46 {offsets = [0, 0], sizes = [8, 96], strides = [1, 1]} : vector<8x128xf32> to vector<8x96xf32>
    %48 = arith.negf %47 : vector<8x96xf32>
    %49 = math.exp %48 : vector<8x96xf32>
    %cst_11 = arith.constant 1.000000e+00 : f32
    %50 = vector.broadcast %cst_11 : f32 to vector<8x96xf32>
    %51 = arith.addf %50, %49 : vector<8x96xf32>
    %52 = arith.divf %50, %51 : vector<8x96xf32>
    %53 = vector.extract_strided_slice %46 {offsets = [0, 96], sizes = [8, 32], strides = [1, 1]} : vector<8x128xf32> to vector<8x32xf32>
    %54 = math.tanh %53 : vector<8x32xf32>
    %55 = vector.extract_strided_slice %52 {offsets = [0, 0], sizes = [8, 32], strides = [1, 1]} : vector<8x96xf32> to vector<8x32xf32>
    %56 = vector.extract_strided_slice %52 {offsets = [0, 32], sizes = [8, 32], strides = [1, 1]} : vector<8x96xf32> to vector<8x32xf32>
    %57 = vector.extract_strided_slice %52 {offsets = [0, 64], sizes = [8, 32], strides = [1, 1]} : vector<8x96xf32> to vector<8x32xf32>
    %58 = arith.mulf %56, %40 : vector<8x32xf32>
    %59 = arith.mulf %55, %54 : vector<8x32xf32>
    %60 = arith.addf %58, %59 : vector<8x32xf32>
    %61 = math.tanh %60 : vector<8x32xf32>
    %62 = arith.mulf %57, %61 : vector<8x32xf32>
    %c0_12 = arith.constant 0 : index
    %c384 = arith.constant 384 : index
    %63 = vector.load %arg1[%c0_12, %c384] : memref<8x1152xf32, #tpu.memory_space<vmem>>, vector<8x128xf32>
    %64 = arith.truncf %62 : vector<8x32xf32> to vector<8x32xbf16>
    %cst_13 = arith.constant dense<0.000000e+00> : vector<8x128xf32>
    %65 = tpu.matmul %64, %0, %cst_13 {dimension_numbers = #tpu.dot_dimension_numbers<[1], [0], [0], [1], [0, 0, 1, 1], [], []>} : vector<8x32xbf16>, vector<32x128xbf16>, vector<8x128xf32> -> vector<8x128xf32>
    %66 = arith.addf %63, %65 : vector<8x128xf32>
    %67 = vector.extract_strided_slice %66 {offsets = [0, 0], sizes = [8, 96], strides = [1, 1]} : vector<8x128xf32> to vector<8x96xf32>
    %68 = arith.negf %67 : vector<8x96xf32>
    %69 = math.exp %68 : vector<8x96xf32>
    %cst_14 = arith.constant 1.000000e+00 : f32
    %70 = vector.broadcast %cst_14 : f32 to vector<8x96xf32>
    %71 = arith.addf %70, %69 : vector<8x96xf32>
    %72 = arith.divf %70, %71 : vector<8x96xf32>
    %73 = vector.extract_strided_slice %66 {offsets = [0, 96], sizes = [8, 32], strides = [1, 1]} : vector<8x128xf32> to vector<8x32xf32>
    %74 = math.tanh %73 : vector<8x32xf32>
    %75 = vector.extract_strided_slice %72 {offsets = [0, 0], sizes = [8, 32], strides = [1, 1]} : vector<8x96xf32> to vector<8x32xf32>
    %76 = vector.extract_strided_slice %72 {offsets = [0, 32], sizes = [8, 32], strides = [1, 1]} : vector<8x96xf32> to vector<8x32xf32>
    %77 = vector.extract_strided_slice %72 {offsets = [0, 64], sizes = [8, 32], strides = [1, 1]} : vector<8x96xf32> to vector<8x32xf32>
    %78 = arith.mulf %76, %60 : vector<8x32xf32>
    %79 = arith.mulf %75, %74 : vector<8x32xf32>
    %80 = arith.addf %78, %79 : vector<8x32xf32>
    %81 = math.tanh %80 : vector<8x32xf32>
    %82 = arith.mulf %77, %81 : vector<8x32xf32>
    %c0_15 = arith.constant 0 : index
    %c512 = arith.constant 512 : index
    %83 = vector.load %arg1[%c0_15, %c512] : memref<8x1152xf32, #tpu.memory_space<vmem>>, vector<8x128xf32>
    %84 = arith.truncf %82 : vector<8x32xf32> to vector<8x32xbf16>
    %cst_16 = arith.constant dense<0.000000e+00> : vector<8x128xf32>
    %85 = tpu.matmul %84, %0, %cst_16 {dimension_numbers = #tpu.dot_dimension_numbers<[1], [0], [0], [1], [0, 0, 1, 1], [], []>} : vector<8x32xbf16>, vector<32x128xbf16>, vector<8x128xf32> -> vector<8x128xf32>
    %86 = arith.addf %83, %85 : vector<8x128xf32>
    %87 = vector.extract_strided_slice %86 {offsets = [0, 0], sizes = [8, 96], strides = [1, 1]} : vector<8x128xf32> to vector<8x96xf32>
    %88 = arith.negf %87 : vector<8x96xf32>
    %89 = math.exp %88 : vector<8x96xf32>
    %cst_17 = arith.constant 1.000000e+00 : f32
    %90 = vector.broadcast %cst_17 : f32 to vector<8x96xf32>
    %91 = arith.addf %90, %89 : vector<8x96xf32>
    %92 = arith.divf %90, %91 : vector<8x96xf32>
    %93 = vector.extract_strided_slice %86 {offsets = [0, 96], sizes = [8, 32], strides = [1, 1]} : vector<8x128xf32> to vector<8x32xf32>
    %94 = math.tanh %93 : vector<8x32xf32>
    %95 = vector.extract_strided_slice %92 {offsets = [0, 0], sizes = [8, 32], strides = [1, 1]} : vector<8x96xf32> to vector<8x32xf32>
    %96 = vector.extract_strided_slice %92 {offsets = [0, 32], sizes = [8, 32], strides = [1, 1]} : vector<8x96xf32> to vector<8x32xf32>
    %97 = vector.extract_strided_slice %92 {offsets = [0, 64], sizes = [8, 32], strides = [1, 1]} : vector<8x96xf32> to vector<8x32xf32>
    %98 = arith.mulf %96, %80 : vector<8x32xf32>
    %99 = arith.mulf %95, %94 : vector<8x32xf32>
    %100 = arith.addf %98, %99 : vector<8x32xf32>
    %101 = math.tanh %100 : vector<8x32xf32>
    %102 = arith.mulf %97, %101 : vector<8x32xf32>
    %c0_18 = arith.constant 0 : index
    %c640 = arith.constant 640 : index
    %103 = vector.load %arg1[%c0_18, %c640] : memref<8x1152xf32, #tpu.memory_space<vmem>>, vector<8x128xf32>
    %104 = arith.truncf %102 : vector<8x32xf32> to vector<8x32xbf16>
    %cst_19 = arith.constant dense<0.000000e+00> : vector<8x128xf32>
    %105 = tpu.matmul %104, %0, %cst_19 {dimension_numbers = #tpu.dot_dimension_numbers<[1], [0], [0], [1], [0, 0, 1, 1], [], []>} : vector<8x32xbf16>, vector<32x128xbf16>, vector<8x128xf32> -> vector<8x128xf32>
    %106 = arith.addf %103, %105 : vector<8x128xf32>
    %107 = vector.extract_strided_slice %106 {offsets = [0, 0], sizes = [8, 96], strides = [1, 1]} : vector<8x128xf32> to vector<8x96xf32>
    %108 = arith.negf %107 : vector<8x96xf32>
    %109 = math.exp %108 : vector<8x96xf32>
    %cst_20 = arith.constant 1.000000e+00 : f32
    %110 = vector.broadcast %cst_20 : f32 to vector<8x96xf32>
    %111 = arith.addf %110, %109 : vector<8x96xf32>
    %112 = arith.divf %110, %111 : vector<8x96xf32>
    %113 = vector.extract_strided_slice %106 {offsets = [0, 96], sizes = [8, 32], strides = [1, 1]} : vector<8x128xf32> to vector<8x32xf32>
    %114 = math.tanh %113 : vector<8x32xf32>
    %115 = vector.extract_strided_slice %112 {offsets = [0, 0], sizes = [8, 32], strides = [1, 1]} : vector<8x96xf32> to vector<8x32xf32>
    %116 = vector.extract_strided_slice %112 {offsets = [0, 32], sizes = [8, 32], strides = [1, 1]} : vector<8x96xf32> to vector<8x32xf32>
    %117 = vector.extract_strided_slice %112 {offsets = [0, 64], sizes = [8, 32], strides = [1, 1]} : vector<8x96xf32> to vector<8x32xf32>
    %118 = arith.mulf %116, %100 : vector<8x32xf32>
    %119 = arith.mulf %115, %114 : vector<8x32xf32>
    %120 = arith.addf %118, %119 : vector<8x32xf32>
    %121 = math.tanh %120 : vector<8x32xf32>
    %122 = arith.mulf %117, %121 : vector<8x32xf32>
    %c0_21 = arith.constant 0 : index
    %c768 = arith.constant 768 : index
    %123 = vector.load %arg1[%c0_21, %c768] : memref<8x1152xf32, #tpu.memory_space<vmem>>, vector<8x128xf32>
    %124 = arith.truncf %122 : vector<8x32xf32> to vector<8x32xbf16>
    %cst_22 = arith.constant dense<0.000000e+00> : vector<8x128xf32>
    %125 = tpu.matmul %124, %0, %cst_22 {dimension_numbers = #tpu.dot_dimension_numbers<[1], [0], [0], [1], [0, 0, 1, 1], [], []>} : vector<8x32xbf16>, vector<32x128xbf16>, vector<8x128xf32> -> vector<8x128xf32>
    %126 = arith.addf %123, %125 : vector<8x128xf32>
    %127 = vector.extract_strided_slice %126 {offsets = [0, 0], sizes = [8, 96], strides = [1, 1]} : vector<8x128xf32> to vector<8x96xf32>
    %128 = arith.negf %127 : vector<8x96xf32>
    %129 = math.exp %128 : vector<8x96xf32>
    %cst_23 = arith.constant 1.000000e+00 : f32
    %130 = vector.broadcast %cst_23 : f32 to vector<8x96xf32>
    %131 = arith.addf %130, %129 : vector<8x96xf32>
    %132 = arith.divf %130, %131 : vector<8x96xf32>
    %133 = vector.extract_strided_slice %126 {offsets = [0, 96], sizes = [8, 32], strides = [1, 1]} : vector<8x128xf32> to vector<8x32xf32>
    %134 = math.tanh %133 : vector<8x32xf32>
    %135 = vector.extract_strided_slice %132 {offsets = [0, 0], sizes = [8, 32], strides = [1, 1]} : vector<8x96xf32> to vector<8x32xf32>
    %136 = vector.extract_strided_slice %132 {offsets = [0, 32], sizes = [8, 32], strides = [1, 1]} : vector<8x96xf32> to vector<8x32xf32>
    %137 = vector.extract_strided_slice %132 {offsets = [0, 64], sizes = [8, 32], strides = [1, 1]} : vector<8x96xf32> to vector<8x32xf32>
    %138 = arith.mulf %136, %120 : vector<8x32xf32>
    %139 = arith.mulf %135, %134 : vector<8x32xf32>
    %140 = arith.addf %138, %139 : vector<8x32xf32>
    %141 = math.tanh %140 : vector<8x32xf32>
    %142 = arith.mulf %137, %141 : vector<8x32xf32>
    %c0_24 = arith.constant 0 : index
    %c896 = arith.constant 896 : index
    %143 = vector.load %arg1[%c0_24, %c896] : memref<8x1152xf32, #tpu.memory_space<vmem>>, vector<8x128xf32>
    %144 = arith.truncf %142 : vector<8x32xf32> to vector<8x32xbf16>
    %cst_25 = arith.constant dense<0.000000e+00> : vector<8x128xf32>
    %145 = tpu.matmul %144, %0, %cst_25 {dimension_numbers = #tpu.dot_dimension_numbers<[1], [0], [0], [1], [0, 0, 1, 1], [], []>} : vector<8x32xbf16>, vector<32x128xbf16>, vector<8x128xf32> -> vector<8x128xf32>
    %146 = arith.addf %143, %145 : vector<8x128xf32>
    %147 = vector.extract_strided_slice %146 {offsets = [0, 0], sizes = [8, 96], strides = [1, 1]} : vector<8x128xf32> to vector<8x96xf32>
    %148 = arith.negf %147 : vector<8x96xf32>
    %149 = math.exp %148 : vector<8x96xf32>
    %cst_26 = arith.constant 1.000000e+00 : f32
    %150 = vector.broadcast %cst_26 : f32 to vector<8x96xf32>
    %151 = arith.addf %150, %149 : vector<8x96xf32>
    %152 = arith.divf %150, %151 : vector<8x96xf32>
    %153 = vector.extract_strided_slice %146 {offsets = [0, 96], sizes = [8, 32], strides = [1, 1]} : vector<8x128xf32> to vector<8x32xf32>
    %154 = math.tanh %153 : vector<8x32xf32>
    %155 = vector.extract_strided_slice %152 {offsets = [0, 0], sizes = [8, 32], strides = [1, 1]} : vector<8x96xf32> to vector<8x32xf32>
    %156 = vector.extract_strided_slice %152 {offsets = [0, 32], sizes = [8, 32], strides = [1, 1]} : vector<8x96xf32> to vector<8x32xf32>
    %157 = vector.extract_strided_slice %152 {offsets = [0, 64], sizes = [8, 32], strides = [1, 1]} : vector<8x96xf32> to vector<8x32xf32>
    %158 = arith.mulf %156, %140 : vector<8x32xf32>
    %159 = arith.mulf %155, %154 : vector<8x32xf32>
    %160 = arith.addf %158, %159 : vector<8x32xf32>
    %161 = math.tanh %160 : vector<8x32xf32>
    %162 = arith.mulf %157, %161 : vector<8x32xf32>
    %c0_27 = arith.constant 0 : index
    %c1024 = arith.constant 1024 : index
    %163 = vector.load %arg1[%c0_27, %c1024] : memref<8x1152xf32, #tpu.memory_space<vmem>>, vector<8x128xf32>
    %164 = arith.truncf %162 : vector<8x32xf32> to vector<8x32xbf16>
    %cst_28 = arith.constant dense<0.000000e+00> : vector<8x128xf32>
    %165 = tpu.matmul %164, %0, %cst_28 {dimension_numbers = #tpu.dot_dimension_numbers<[1], [0], [0], [1], [0, 0, 1, 1], [], []>} : vector<8x32xbf16>, vector<32x128xbf16>, vector<8x128xf32> -> vector<8x128xf32>
    %166 = arith.addf %163, %165 : vector<8x128xf32>
    %167 = vector.extract_strided_slice %166 {offsets = [0, 0], sizes = [8, 96], strides = [1, 1]} : vector<8x128xf32> to vector<8x96xf32>
    %168 = arith.negf %167 : vector<8x96xf32>
    %169 = math.exp %168 : vector<8x96xf32>
    %cst_29 = arith.constant 1.000000e+00 : f32
    %170 = vector.broadcast %cst_29 : f32 to vector<8x96xf32>
    %171 = arith.addf %170, %169 : vector<8x96xf32>
    %172 = arith.divf %170, %171 : vector<8x96xf32>
    %173 = vector.extract_strided_slice %166 {offsets = [0, 96], sizes = [8, 32], strides = [1, 1]} : vector<8x128xf32> to vector<8x32xf32>
    %174 = math.tanh %173 : vector<8x32xf32>
    %175 = vector.extract_strided_slice %172 {offsets = [0, 0], sizes = [8, 32], strides = [1, 1]} : vector<8x96xf32> to vector<8x32xf32>
    %176 = vector.extract_strided_slice %172 {offsets = [0, 32], sizes = [8, 32], strides = [1, 1]} : vector<8x96xf32> to vector<8x32xf32>
    %177 = vector.extract_strided_slice %172 {offsets = [0, 64], sizes = [8, 32], strides = [1, 1]} : vector<8x96xf32> to vector<8x32xf32>
    %178 = arith.mulf %176, %160 : vector<8x32xf32>
    %179 = arith.mulf %175, %174 : vector<8x32xf32>
    %180 = arith.addf %178, %179 : vector<8x32xf32>
    %181 = math.tanh %180 : vector<8x32xf32>
    %182 = arith.mulf %177, %181 : vector<8x32xf32>
    %183 = tpu.concatenate %22, %42, %62, %82, %102, %122, %142, %162, %182 in 1 : vector<8x32xf32>, vector<8x32xf32>, vector<8x32xf32>, vector<8x32xf32>, vector<8x32xf32>, vector<8x32xf32>, vector<8x32xf32>, vector<8x32xf32>, vector<8x32xf32> -> vector<8x288xf32>
    %c0_30 = arith.constant 0 : index
    %c0_31 = arith.constant 0 : index
    %184 = vector.load %arg3[%c0_30, %c0_31] : memref<8x288xf32, #tpu.memory_space<vmem>>, vector<8x288xf32>
    tpu.vector_store %arg3[%c0_30, %c0_31], %183 {strides = array<i32>} : memref<8x288xf32, #tpu.memory_space<vmem>>, vector<8x288xf32>,
    %185 = tpu.concatenate %182, %180 in 1 : vector<8x32xf32>, vector<8x32xf32> -> vector<8x64xf32>
    %c0_32 = arith.constant 0 : index
    %c0_33 = arith.constant 0 : index
    %186 = vector.load %arg4[%c0_32, %c0_33] : memref<8x64xf32, #tpu.memory_space<vmem>>, vector<8x64xf32>
    tpu.vector_store %arg4[%c0_32, %c0_33], %185 {strides = array<i32>} : memref<8x64xf32, #tpu.memory_space<vmem>>, vector<8x64xf32>,
    return
  }
  func.func @transform_0(%arg0: i32) -> (i32, i32) {
    %c0_i32 = arith.constant 0 : i32
    %c0_i32_0 = arith.constant 0 : i32
    return %arg0, %c0_i32 : i32, i32
  }
  func.func @transform_1(%arg0: i32) -> (i32, i32) {
    %c0_i32 = arith.constant 0 : i32
    %c0_i32_0 = arith.constant 0 : i32
    %c0_i32_1 = arith.constant 0 : i32
    return %c0_i32, %c0_i32_0 : i32, i32
  }
  func.func @transform_2(%arg0: i32) -> (i32, i32) {
    %c0_i32 = arith.constant 0 : i32
    %c0_i32_0 = arith.constant 0 : i32
    return %arg0, %c0_i32 : i32, i32
  }
  func.func @transform_3(%arg0: i32) -> (i32, i32) {
    %c0_i32 = arith.constant 0 : i32
    %c0_i32_0 = arith.constant 0 : i32
    return %arg0, %c0_i32 : i32, i32
  }
}

</mosaic_0001>

<bundles_post_ra>
// kernel: row_encoding_forward.1
= control target key start
LH: loop header
LB: loop body
LE: loop exit
PB: predicated region body
PF: predicated region fallthrough
CT: control target
= control target key end

     0   :  { %v931_v0 = vmov 0.0   ;;  %vm932_vm0 = vmmov 0   ;;  %v933_v3 = vmov 0   ;;  %s934_s17 = smov 32   ;;  %s935_s18 = smov 64   ;;  %vm31_vm1 = vcmask 261120   ;;  %s1150_s1 = inlined_call_operand.vmem [shape: bf16[32,128], index: 1, kind: input, shape index: {}]   ;;  %s1151_s0 = inlined_call_operand.vmem [shape: f32[8,1152], index: 0, kind: input, shape index: {}]   ;;  %s1152_s2 = inlined_call_operand.vmem [shape: f32[8,288], index: 2, kind: output, shape index: {0}]   ;;  %s1153_s3 = inlined_call_operand.vmem [shape: f32[8,64], index: 3, kind: output, shape index: {1}]  }
   0x1   :  { %779 = vmatprep.subr.bf16.mxu0 %v931_v0  ;;  %v961_v1 = vld [vmem:[%s1150_s1] sm:$0xff]   ;;  %783 = vmatprep.mubr.msk.bf16.mxu0 %vm932_vm0, %v931_v0  ;;  %v972_v2 = vld [vmem:[%s1150_s1 + $0x8] sm:$0xff]   ;;  %v173_v46 = vld [vmem:[%s1151_s0 + $0x10] sm:$0xff]  ;;  %vm713_vm2 = vcmask 523264   ;;  %vm715_vm3 = vcmask 785408  }
   0x2   :  { %787 = vmatprep.subr.bf16.mxu1 %v931_v0  ;;  %791 = vmatprep.mubr.msk.bf16.mxu1 %vm932_vm0, %v931_v0  ;;  %v18_v4 = vld [vmem:[%s1151_s0] sm:$0xff]  ;;  %v100_v25 = vld [vmem:[%s1151_s0 + $0x8] sm:$0xff] }
   0x3   :  { %780 = vmatpush3.bf16.msra.mxu0 %v961_v1  ;;  %788 = vmatpush3.bf16.msra.mxu1 %v961_v1 }
   0x4   :  { %781 = vmatprep.subr.bf16.mxu0 %v931_v0  ;;  %789 = vmatprep.subr.bf16.mxu1 %v931_v0 }
   0x7   :  { %782 = vmatpush3.bf16.msra.mxu0 %v972_v2  ;;  %790 = vmatpush3.bf16.msra.mxu1 %v972_v2 }
   0x8   :  { %795 = vmatprep.subr.bf16.mxu0 %v931_v0  ;;  %803 = vmatprep.subr.bf16.mxu1 %v931_v0 }
   0xa   :  { %784 = vmatmul.mubr.bf16.vlgmr.msra.gmra.mrb[0].mxu0 %v933_v3 }
   0xb   :  { %796 = vmatpush3.bf16.msra.mxu0 %v961_v1  ;;  %799 = vmatprep.mubr.msk.bf16.mxu0 %vm932_vm0, %v931_v0 }
   0xc   :  { %797 = vmatprep.subr.bf16.mxu0 %v931_v0 }
   0xf   :  { %798 = vmatpush3.bf16.msra.mxu0 %v972_v2 }
  0x10   :  { %811 = vmatprep.subr.bf16.mxu0 %v931_v0 }
  0xdd   :  { %v69_v5 = vpop.f32.mrb[0].mxu0 }
  0xde   :  { %v75_v6 = vadd.f32 %v69_v5, %v18_v4  ;;  %v785_v7 = vpop.f32.mrb[1].mxu0 }
  0xdf   :  { %v72_v8 = vpop.f32.mrb[2].mxu0 }
  0xe0   :  { %859 = vtanh.f32 %v75_v6  ;;  %v786_v9 = vpop.f32.mrb[3].mxu0  ;;  %v735_v11 = vmul.f32 -1.442695, %v75_v6  ;;  %v246_v6 = vld [vmem:[%s1151_s0 + $0x18] sm:$0xff] }
  0xe2   :  { %861 = vpow2.f32 %v735_v11 }
  0xea   :  { %v860_v10 = vpop.eup %859 }
  0xeb   :  { %85 = vrot.lane.b32.xlu0 %v860_v10, %s934_s17 }
  0xec   :  { %v862_v12 = vpop.eup %861 }
  0xed   :  { %v79_v13 = vadd.f32 1.0, %v862_v12 }
  0xef   :  { %863 = vrcp.f32 %v79_v13 }
  0xf9   :  { %v864_v14 = vpop.eup %863 }
  0xfa   :  { %v83_v17 = vmul.f32 0.0, %v864_v14 }
 0x15d   :  { %v86_v15 = vpop.permute.xlu0 %85 }
 0x15e   :  { %v88_v16 = vmul.f32 %v864_v14, %v86_v15 }
 0x160   :  { %90 = vrot.lane.b32.xlu0 %v88_v16, %s934_s17 }
 0x1d2   :  { %v91_v18 = vpop.permute.xlu0 %90 }
 0x1d3   :  { %v93_v19 = vadd.f32 %v91_v18, %v83_v17 }
 0x1d5   :  { %865 = vtanh.f32 %v93_v19 }
 0x1df   :  { %v866_v20 = vpop.eup %865 }
 0x1e0   :  { %96 = vrot.lane.b32.xlu1 %v866_v20, %s934_s17 }
 0x252   :  { %v97_v21 = vpop.permute.xlu1 %96 }
 0x253   :  { %v993_v22 = vmul.f32 %v864_v14, %v97_v21 }
 0x255   :  { %v101_v23 = vpack.c.bf16 %v993_v22, %v993_v22 }
 0x257   :  { %103 = vrot.lane.b32.xlu1 %v101_v23, %s935_s18 }
 0x2c9   :  { %v104_v24 = vpop.permute.xlu1 %103 }
 0x2ca   :  { %792 = vmatmul.mubr.msk.bf16.vlgmr.msra.gmra.mrb[0].mxu1 %vm31_vm1, %v104_v24 }
 0x2cb   :  { %804 = vmatpush3.bf16.msra.mxu1 %v961_v1  ;;  %807 = vmatprep.mubr.msk.bf16.mxu1 %vm932_vm0, %v931_v0 }
 0x2cc   :  { %805 = vmatprep.subr.bf16.mxu1 %v931_v0 }
 0x2cf   :  { %806 = vmatpush3.bf16.msra.mxu1 %v972_v2 }
 0x2d0   :  { %819 = vmatprep.subr.bf16.mxu1 %v931_v0 }
 0x39d   :  { %v142_v26 = vpop.f32.mrb[0].mxu1 }
 0x39e   :  { %v148_v27 = vadd.f32 %v142_v26, %v100_v25  ;;  %v793_v28 = vpop.f32.mrb[1].mxu1 }
 0x39f   :  { %v145_v29 = vpop.f32.mrb[2].mxu1  ;;  %v319_v28 = vld [vmem:[%s1151_s0 + $0x20] sm:$0xff] }
 0x3a0   :  { %867 = vtanh.f32 %v148_v27  ;;  %v794_v30 = vpop.f32.mrb[3].mxu1  ;;  %v737_v32 = vmul.f32 -1.442695, %v148_v27 }
 0x3a2   :  { %869 = vpow2.f32 %v737_v32 }
 0x3aa   :  { %v868_v31 = vpop.eup %867 }
 0x3ab   :  { %158 = vrot.lane.b32.xlu0 %v868_v31, %s934_s17 }
 0x3ac   :  { %v870_v33 = vpop.eup %869 }
 0x3ad   :  { %v152_v34 = vadd.f32 1.0, %v870_v33 }
 0x3af   :  { %871 = vrcp.f32 %v152_v34 }
 0x3b9   :  { %v872_v35 = vpop.eup %871 }
 0x3ba   :  { %v156_v38 = vmul.f32 %v872_v35, %v93_v19 }
 0x41d   :  { %v159_v36 = vpop.permute.xlu0 %158 }
 0x41e   :  { %v161_v37 = vmul.f32 %v872_v35, %v159_v36 }
 0x420   :  { %163 = vrot.lane.b32.xlu1 %v161_v37, %s934_s17 }
 0x492   :  { %v164_v39 = vpop.permute.xlu1 %163 }
 0x493   :  { %v166_v40 = vadd.f32 %v164_v39, %v156_v38 }
 0x495   :  { %873 = vtanh.f32 %v166_v40 }
 0x49f   :  { %v874_v41 = vpop.eup %873 }
 0x4a0   :  { %169 = vrot.lane.b32.xlu0 %v874_v41, %s934_s17 }
 0x512   :  { %v170_v42 = vpop.permute.xlu0 %169 }
 0x513   :  { %v1011_v43 = vmul.f32 %v872_v35, %v170_v42 }
 0x515   :  { %v174_v44 = vpack.c.bf16 %v1011_v43, %v1011_v43 }
 0x517   :  { %176 = vrot.lane.b32.xlu1 %v174_v44, %s935_s18 }
 0x589   :  { %v177_v45 = vpop.permute.xlu1 %176 }
 0x58a   :  { %800 = vmatmul.mubr.msk.bf16.vlgmr.msra.gmra.mrb[4].mxu0 %vm31_vm1, %v177_v45 }
 0x58b   :  { %812 = vmatpush3.bf16.msra.mxu0 %v961_v1  ;;  %815 = vmatprep.mubr.msk.bf16.mxu0 %vm932_vm0, %v931_v0 }
 0x58c   :  { %813 = vmatprep.subr.bf16.mxu0 %v931_v0 }
 0x58f   :  { %814 = vmatpush3.bf16.msra.mxu0 %v972_v2 }
 0x590   :  { %827 = vmatprep.subr.bf16.mxu0 %v931_v0 }
 0x65d   :  { %v215_v47 = vpop.f32.mrb[4].mxu0 }
 0x65e   :  { %v221_v48 = vadd.f32 %v215_v47, %v173_v46  ;;  %v801_v49 = vpop.f32.mrb[5].mxu0 }
 0x65f   :  { %v218_v50 = vpop.f32.mrb[6].mxu0 }
 0x660   :  { %875 = vtanh.f32 %v221_v48  ;;  %v802_v51 = vpop.f32.mrb[7].mxu0  ;;  %v739_v53 = vmul.f32 -1.442695, %v221_v48  ;;  %v392_v50 = vld [vmem:[%s1151_s0 + $0x28] sm:$0xff] }
 0x662   :  { %877 = vpow2.f32 %v739_v53 }
 0x66a   :  { %v876_v52 = vpop.eup %875 }
 0x66b   :  { %231 = vrot.lane.b32.xlu0 %v876_v52, %s934_s17 }
 0x66c   :  { %v878_v54 = vpop.eup %877 }
 0x66d   :  { %v225_v55 = vadd.f32 1.0, %v878_v54 }
 0x66f   :  { %879 = vrcp.f32 %v225_v55 }
 0x679   :  { %v880_v56 = vpop.eup %879 }
 0x67a   :  { %v229_v59 = vmul.f32 %v880_v56, %v166_v40 }
 0x6dd   :  { %v232_v57 = vpop.permute.xlu0 %231 }
 0x6de   :  { %v234_v58 = vmul.f32 %v880_v56, %v232_v57 }
 0x6e0   :  { %236 = vrot.lane.b32.xlu1 %v234_v58, %s934_s17 }
 0x752   :  { %v237_v60 = vpop.permute.xlu1 %236 }
 0x753   :  { %v239_v61 = vadd.f32 %v237_v60, %v229_v59 }
 0x755   :  { %881 = vtanh.f32 %v239_v61 }
 0x75f   :  { %v882_v62 = vpop.eup %881 }
 0x760   :  { %242 = vrot.lane.b32.xlu0 %v882_v62, %s934_s17 }
 0x7d2   :  { %v243_v63 = vpop.permute.xlu0 %242 }
 0x7d3   :  { %v1029_v3 = vmul.f32 %v880_v56, %v243_v63 }
 0x7d5   :  { %v247_v4 = vpack.c.bf16 %v1029_v3, %v1029_v3 }
 0x7d7   :  { %249 = vrot.lane.b32.xlu1 %v247_v4, %s935_s18 }
 0x849   :  { %v250_v5 = vpop.permute.xlu1 %249 }
 0x84a   :  { %808 = vmatmul.mubr.msk.bf16.vlgmr.msra.gmra.mrb[4].mxu1 %vm31_vm1, %v250_v5 }
 0x84b   :  { %820 = vmatpush3.bf16.msra.mxu1 %v961_v1  ;;  %823 = vmatprep.mubr.msk.bf16.mxu1 %vm932_vm0, %v931_v0 }
 0x84c   :  { %821 = vmatprep.subr.bf16.mxu1 %v931_v0 }
 0x84f   :  { %822 = vmatpush3.bf16.msra.mxu1 %v972_v2 }
 0x850   :  { %835 = vmatprep.subr.bf16.mxu1 %v931_v0 }
 0x91d   :  { %v288_v7 = vpop.f32.mrb[4].mxu1 }
 0x91e   :  { %v294_v8 = vadd.f32 %v288_v7, %v246_v6  ;;  %v809_v9 = vpop.f32.mrb[5].mxu1 }
 0x91f   :  { %v291_v10 = vpop.f32.mrb[6].mxu1 }
 0x920   :  { %883 = vtanh.f32 %v294_v8  ;;  %v810_v11 = vpop.f32.mrb[7].mxu1  ;;  %v741_v13 = vmul.f32 -1.442695, %v294_v8 }
 0x921   :  { %v465_v11 = vld [vmem:[%s1151_s0 + $0x30] sm:$0xff] }
 0x922   :  { %885 = vpow2.f32 %v741_v13 }
 0x92a   :  { %v884_v12 = vpop.eup %883 }
 0x92b   :  { %304 = vrot.lane.b32.xlu0 %v884_v12, %s934_s17 }
 0x92c   :  { %v886_v14 = vpop.eup %885 }
 0x92d   :  { %v298_v15 = vadd.f32 1.0, %v886_v14 }
 0x92f   :  { %887 = vrcp.f32 %v298_v15 }
 0x939   :  { %v888_v16 = vpop.eup %887 }
 0x93a   :  { %v302_v19 = vmul.f32 %v888_v16, %v239_v61 }
 0x99d   :  { %v305_v17 = vpop.permute.xlu0 %304 }
 0x99e   :  { %v307_v18 = vmul.f32 %v888_v16, %v305_v17 }
 0x9a0   :  { %309 = vrot.lane.b32.xlu1 %v307_v18, %s934_s17 }
 0xa12   :  { %v310_v20 = vpop.permute.xlu1 %309 }
 0xa13   :  { %v312_v21 = vadd.f32 %v310_v20, %v302_v19 }
 0xa15   :  { %889 = vtanh.f32 %v312_v21 }
 0xa1f   :  { %v890_v23 = vpop.eup %889 }
 0xa20   :  { %315 = vrot.lane.b32.xlu0 %v890_v23, %s934_s17 }
 0xa92   :  { %v316_v24 = vpop.permute.xlu0 %315 }
 0xa93   :  { %v1047_v25 = vmul.f32 %v888_v16, %v316_v24 }
 0xa95   :  { %v320_v26 = vpack.c.bf16 %v1047_v25, %v1047_v25 }
 0xa97   :  { %322 = vrot.lane.b32.xlu1 %v320_v26, %s935_s18 }
 0xb09   :  { %v323_v27 = vpop.permute.xlu1 %322 }
 0xb0a   :  { %816 = vmatmul.mubr.msk.bf16.vlgmr.msra.gmra.mrb[8].mxu0 %vm31_vm1, %v323_v27 }
 0xb0b   :  { %828 = vmatpush3.bf16.msra.mxu0 %v961_v1  ;;  %831 = vmatprep.mubr.msk.bf16.mxu0 %vm932_vm0, %v931_v0 }
 0xb0c   :  { %829 = vmatprep.subr.bf16.mxu0 %v931_v0 }
 0xb0f   :  { %830 = vmatpush3.bf16.msra.mxu0 %v972_v2 }
 0xb10   :  { %843 = vmatprep.subr.bf16.mxu0 %v931_v0 }
 0xbdd   :  { %v361_v29 = vpop.f32.mrb[8].mxu0 }
 0xbde   :  { %v367_v30 = vadd.f32 %v361_v29, %v319_v28  ;;  %v817_v31 = vpop.f32.mrb[9].mxu0 }
 0xbdf   :  { %v364_v32 = vpop.f32.mrb[10].mxu0  ;;  %v538_v31 = vld [vmem:[%s1151_s0 + $0x38] sm:$0xff] }
 0xbe0   :  { %891 = vtanh.f32 %v367_v30  ;;  %v818_v33 = vpop.f32.mrb[11].mxu0  ;;  %v743_v35 = vmul.f32 -1.442695, %v367_v30 }
 0xbe2   :  { %893 = vpow2.f32 %v743_v35 }
 0xbea   :  { %v892_v34 = vpop.eup %891 }
 0xbeb   :  { %377 = vrot.lane.b32.xlu0 %v892_v34, %s934_s17 }
 0xbec   :  { %v894_v36 = vpop.eup %893 }
 0xbed   :  { %v371_v37 = vadd.f32 1.0, %v894_v36 }
 0xbef   :  { %895 = vrcp.f32 %v371_v37 }
 0xbf9   :  { %v896_v38 = vpop.eup %895 }
 0xbfa   :  { %v375_v41 = vmul.f32 %v896_v38, %v312_v21 }
 0xc5d   :  { %v378_v39 = vpop.permute.xlu0 %377 }
 0xc5e   :  { %v380_v40 = vmul.f32 %v896_v38, %v378_v39 }
 0xc60   :  { %382 = vrot.lane.b32.xlu1 %v380_v40, %s934_s17 }
 0xcd2   :  { %v383_v42 = vpop.permute.xlu1 %382 }
 0xcd3   :  { %v385_v44 = vadd.f32 %v383_v42, %v375_v41 }
 0xcd5   :  { %897 = vtanh.f32 %v385_v44 }
 0xcdf   :  { %v898_v45 = vpop.eup %897 }
 0xce0   :  { %388 = vrot.lane.b32.xlu0 %v898_v45, %s934_s17 }
 0xd52   :  { %v389_v46 = vpop.permute.xlu0 %388 }
 0xd53   :  { %v1065_v47 = vmul.f32 %v896_v38, %v389_v46 }
 0xd55   :  { %v393_v48 = vpack.c.bf16 %v1065_v47, %v1065_v47 }
 0xd57   :  { %395 = vrot.lane.b32.xlu1 %v393_v48, %s935_s18 }
 0xdc9   :  { %v396_v49 = vpop.permute.xlu1 %395 }
 0xdca   :  { %824 = vmatmul.mubr.msk.bf16.vlgmr.msra.gmra.mrb[8].mxu1 %vm31_vm1, %v396_v49 }
 0xdcb   :  { %836 = vmatpush3.bf16.msra.mxu1 %v961_v1  ;;  %839 = vmatprep.mubr.msk.bf16.mxu1 %vm932_vm0, %v931_v0 }
 0xdcc   :  { %837 = vmatprep.subr.bf16.mxu1 %v931_v0 }
 0xdcf   :  { %838 = vmatpush3.bf16.msra.mxu1 %v972_v2 }
 0xe9d   :  { %v434_v51 = vpop.f32.mrb[8].mxu1 }
 0xe9e   :  { %v440_v52 = vadd.f32 %v434_v51, %v392_v50  ;;  %v825_v53 = vpop.f32.mrb[9].mxu1 }
 0xe9f   :  { %v437_v54 = vpop.f32.mrb[10].mxu1 }
 0xea0   :  { %899 = vtanh.f32 %v440_v52  ;;  %v826_v55 = vpop.f32.mrb[11].mxu1  ;;  %v745_v57 = vmul.f32 -1.442695, %v440_v52  ;;  %v611_v54 = vld [vmem:[%s1151_s0 + $0x40] sm:$0xff]  ;;  %s936_s0 = smov 96  }
 0xea2   :  { %901 = vpow2.f32 %v745_v57 }
 0xeaa   :  { %v900_v56 = vpop.eup %899 }
 0xeab   :  { %450 = vrot.lane.b32.xlu0 %v900_v56, %s934_s17 }
 0xeac   :  { %v902_v58 = vpop.eup %901 }
 0xead   :  { %v444_v59 = vadd.f32 1.0, %v902_v58 }
 0xeaf   :  { %903 = vrcp.f32 %v444_v59 }
 0xeb9   :  { %v904_v60 = vpop.eup %903 }
 0xeba   :  { %v448_v63 = vmul.f32 %v904_v60, %v385_v44 }
 0xf1d   :  { %v451_v61 = vpop.permute.xlu0 %450 }
 0xf1e   :  { %v453_v62 = vmul.f32 %v904_v60, %v451_v61 }
 0xf20   :  { %455 = vrot.lane.b32.xlu1 %v453_v62, %s934_s17 }
 0xf92   :  { %v456_v4 = vpop.permute.xlu1 %455 }
 0xf93   :  { %v458_v5 = vadd.f32 %v456_v4, %v448_v63 }
 0xf95   :  { %905 = vtanh.f32 %v458_v5 }
 0xf9f   :  { %v906_v6 = vpop.eup %905 }
 0xfa0   :  { %461 = vrot.lane.b32.xlu0 %v906_v6, %s934_s17 }
0x1012   :  { %v462_v7 = vpop.permute.xlu0 %461 }
0x1013   :  { %v1082_v8 = vmul.f32 %v904_v60, %v462_v7 }
0x1015   :  { %v466_v9 = vpack.c.bf16 %v1082_v8, %v1082_v8 }
0x1017   :  { %468 = vrot.lane.b32.xlu1 %v466_v9, %s935_s18 }
0x1089   :  { %v469_v10 = vpop.permute.xlu1 %468 }
0x108a   :  { %832 = vmatmul.mubr.msk.bf16.vlgmr.msra.gmra.mrb[12].mxu0 %vm31_vm1, %v469_v10 }
0x108b   :  { %844 = vmatpush3.bf16.msra.mxu0 %v961_v1  ;;  %847 = vmatprep.mubr.msk.bf16.mxu0 %vm932_vm0, %v931_v0 }
0x108c   :  { %845 = vmatprep.subr.bf16.mxu0 %v931_v0 }
0x108f   :  { %846 = vmatpush3.bf16.msra.mxu0 %v972_v2 }
0x115d   :  { %v507_v12 = vpop.f32.mrb[12].mxu0 }
0x115e   :  { %v513_v13 = vadd.f32 %v507_v12, %v465_v11  ;;  %v833_v14 = vpop.f32.mrb[13].mxu0 }
0x115f   :  { %v510_v15 = vpop.f32.mrb[14].mxu0 }
0x1160   :  { %907 = vtanh.f32 %v513_v13  ;;  %v834_v16 = vpop.f32.mrb[15].mxu0  ;;  %v747_v1 = vmul.f32 -1.442695, %v513_v13 }
0x1162   :  { %909 = vpow2.f32 %v747_v1 }
0x116a   :  { %v908_v17 = vpop.eup %907 }
0x116b   :  { %523 = vrot.lane.b32.xlu0 %v908_v17, %s934_s17 }
0x116c   :  { %v910_v18 = vpop.eup %909 }
0x116d   :  { %v517_v19 = vadd.f32 1.0, %v910_v18 }
0x116f   :  { %911 = vrcp.f32 %v517_v19 }
0x1179   :  { %v912_v0 = vpop.eup %911 }
0x117a   :  { %v521_v21 = vmul.f32 %v912_v0, %v458_v5 }
0x11dd   :  { %v524_v2 = vpop.permute.xlu0 %523 }
0x11de   :  { %v526_v20 = vmul.f32 %v912_v0, %v524_v2 }
0x11e0   :  { %528 = vrot.lane.b32.xlu1 %v526_v20, %s934_s17 }
0x1252   :  { %v529_v23 = vpop.permute.xlu1 %528 }
0x1253   :  { %v531_v24 = vadd.f32 %v529_v23, %v521_v21 }
0x1255   :  { %913 = vtanh.f32 %v531_v24 }
0x125f   :  { %v914_v26 = vpop.eup %913 }
0x1260   :  { %534 = vrot.lane.b32.xlu0 %v914_v26, %s934_s17 }
0x12d2   :  { %v535_v27 = vpop.permute.xlu0 %534 }
0x12d3   :  { %v1099_v28 = vmul.f32 %v912_v0, %v535_v27 }
0x12d5   :  { %v539_v29 = vpack.c.bf16 %v1099_v28, %v1099_v28 }
0x12d7   :  { %541 = vrot.lane.b32.xlu1 %v539_v29, %s935_s18 }
0x1349   :  { %v542_v30 = vpop.permute.xlu1 %541 }
0x134a   :  { %840 = vmatmul.mubr.msk.bf16.vlgmr.msra.gmra.mrb[12].mxu1 %vm31_vm1, %v542_v30 }
0x141d   :  { %v580_v32 = vpop.f32.mrb[12].mxu1 }
0x141e   :  { %v586_v33 = vadd.f32 %v580_v32, %v538_v31  ;;  %v841_v34 = vpop.f32.mrb[13].mxu1 }
0x141f   :  { %v583_v35 = vpop.f32.mrb[14].mxu1 }
0x1420   :  { %915 = vtanh.f32 %v586_v33  ;;  %v842_v36 = vpop.f32.mrb[15].mxu1  ;;  %v749_v38 = vmul.f32 -1.442695, %v586_v33 }
0x1422   :  { %917 = vpow2.f32 %v749_v38 }
0x142a   :  { %v916_v37 = vpop.eup %915 }
0x142b   :  { %596 = vrot.lane.b32.xlu0 %v916_v37, %s934_s17 }
0x142c   :  { %v918_v39 = vpop.eup %917 }
0x142d   :  { %v590_v40 = vadd.f32 1.0, %v918_v39 }
0x142f   :  { %919 = vrcp.f32 %v590_v40 }
0x1439   :  { %v920_v41 = vpop.eup %919 }
0x143a   :  { %v594_v45 = vmul.f32 %v920_v41, %v531_v24 }
0x149d   :  { %v597_v42 = vpop.permute.xlu0 %596 }
0x149e   :  { %v599_v44 = vmul.f32 %v920_v41, %v597_v42 }
0x14a0   :  { %601 = vrot.lane.b32.xlu1 %v599_v44, %s934_s17 }
0x1512   :  { %v602_v46 = vpop.permute.xlu1 %601 }
0x1513   :  { %v604_v48 = vadd.f32 %v602_v46, %v594_v45 }
0x1515   :  { %921 = vtanh.f32 %v604_v48 }
0x151f   :  { %v922_v49 = vpop.eup %921 }
0x1520   :  { %607 = vrot.lane.b32.xlu0 %v922_v49, %s934_s17 }
0x1592   :  { %v608_v50 = vpop.permute.xlu0 %607 }
0x1593   :  { %v610_v51 = vmul.f32 %v920_v41, %v608_v50 }
0x1595   :  { %v612_v52 = vpack.c.bf16 %v610_v51, %v610_v51 }
0x1597   :  { %614 = vrot.lane.b32.xlu1 %v612_v52, %s935_s18 }
0x1609   :  { %v615_v53 = vpop.permute.xlu1 %614 }
0x160a   :  { %848 = vmatmul.mubr.msk.bf16.vlgmr.msra.gmra.mrb[16].mxu0 %vm31_vm1, %v615_v53 }
0x16dd   :  { %v653_v55 = vpop.f32.mrb[16].mxu0 }
0x16de   :  { %v659_v56 = vadd.f32 %v653_v55, %v611_v54  ;;  %v849_v57 = vpop.f32.mrb[17].mxu0 }
0x16df   :  { %v656_v58 = vpop.f32.mrb[18].mxu0 }
0x16e0   :  { %923 = vtanh.f32 %v659_v56  ;;  %v850_v59 = vpop.f32.mrb[19].mxu0  ;;  %v751_v61 = vmul.f32 -1.442695, %v659_v56 }
0x16e2   :  { %925 = vpow2.f32 %v751_v61 }
0x16ea   :  { %v924_v60 = vpop.eup %923 }
0x16eb   :  { %669 = vrot.lane.b32.xlu0 %v924_v60, %s934_s17 }
0x16ec   :  { %v926_v62 = vpop.eup %925 }
0x16ed   :  { %v663_v63 = vadd.f32 1.0, %v926_v62 }
0x16ef   :  { %927 = vrcp.f32 %v663_v63 }
0x16f9   :  { %v928_v4 = vpop.eup %927 }
0x16fa   :  { %v667_v7 = vmul.f32 %v928_v4, %v604_v48 }
0x175d   :  { %v670_v5 = vpop.permute.xlu0 %669 }
0x175e   :  { %v672_v6 = vmul.f32 %v928_v4, %v670_v5 }
0x1760   :  { %674 = vrot.lane.b32.xlu1 %v672_v6, %s934_s17 }
0x1764   :  { %685 = vrot.lane.b32.xlu1 %v993_v22, %s935_s18 }
0x1768   :  { %697 = vrot.lane.b32.xlu1 %v1065_v47, %s935_s18 }
0x176c   :  { %693 = vrot.lane.b32.xlu1 %v1047_v25, %s934_s17 }
0x17d2   :  { %v675_v9 = vpop.permute.xlu1 %674 }
0x17d3   :  { %v677_v10 = vadd.f32 %v675_v9, %v667_v7 }
0x17d5   :  { %929 = vtanh.f32 %v677_v10 }
0x17d6   :  { %v686_v22 = vpop.permute.xlu1 %685 }
0x17da   :  { %v698_v12 = vpop.permute.xlu1 %697 }
0x17de   :  { %v694_v15 = vpop.permute.xlu1 %693 }
0x17df   :  { %v930_v11 = vpop.eup %929 }
0x17e0   :  { %680 = vrot.lane.b32.xlu0 %v930_v11, %s934_s17 }
0x17e4   :  { %689 = vrot.lane.b32.xlu0 %v1011_v43, %s936_s0 }
0x17e8   :  { %701 = vrot.lane.b32.xlu0 %v1082_v8, %s936_s0 }
0x17ec   :  { %705 = vrot.lane.b32.xlu0 %v610_v51, %s934_s17 }
0x1852   :  { %v681_v47 = vpop.permute.xlu0 %680 }
0x1853   :  { %v683_v13 = vmul.f32 %v928_v4, %v681_v47 }
0x1855   :  { %709 = vrot.lane.b32.xlu1 %v683_v13, %s935_s18 }
0x1856   :  { %v690_v25 = vpop.permute.xlu0 %689 }
0x1857   :  { %v712_v14 = vsel %vm31_vm1, %v686_v22, %v690_v25 }
0x1858   :  { %v714_v16 = vsel %vm713_vm2, %v712_v14, %v1029_v3 }
0x1859   :  { %v716_v43 = vsel %vm715_vm3, %v714_v16, %v694_v15 }
0x185a   :  { %v702_v17 = vpop.permute.xlu0 %701  ;;  %720 = vst [vmem:[%s1152_s2] sm:$0xff] %v716_v43 }
0x185b   :  { %v717_v8 = vsel %vm31_vm1, %v698_v12, %v702_v17 }
0x185c   :  { %v718_v1 = vsel %vm713_vm2, %v717_v8, %v1099_v28 }
0x185e   :  { %v706_v18 = vpop.permute.xlu0 %705 }
0x185f   :  { %v719_v19 = vsel %vm715_vm3, %v718_v1, %v706_v18 }
0x1860   :  { %721 = vst [vmem:[%s1152_s2 + $0x8] sm:$0xff] %v719_v19 }
0x18c7   :  { %v710_v0 = vpop.permute.xlu1 %709 }
0x18c8   :  { %722 = vst.msk [vmem:[%s1152_s2 + $0x10] sm:$0xff] %vm31_vm1, %v710_v0  ;;  %v723_v3 = vsel %vm31_vm1, %v710_v0, %v677_v10 }
0x18c9   :  { %724 = vst.msk [vmem:[%s1153_s3] sm:$0xff] %vm713_vm2, %v723_v3 }

</bundles_post_ra>
